<compile_context>
chip_gen: v7x
topology: tpu7x:2x2x1
jax: 0.10.0
libtpu: 0.0.40
codegen_flags: <defaults>
</compile_context>

<pallas_src>
import numpy as np

import jax
import jax.numpy as jnp
from jax import lax
from jax.experimental import pallas as pl
from jax.experimental.pallas import tpu as pltpu


# ----------------------------------------------------------------------------
# Kernel
# ----------------------------------------------------------------------------
def _basic_block_kernel(x_ref,      # (Nb, H, 3*W*Cin)    bf16 im2col'd input rows
                        w1_ref,     # (3*W*Cin, 2*W*Cout) bf16 [conv1*s1 | shortcut*ss]
                        b1_ref,     # (1, W*Cout)         f32  bn1 bias
                        w2_ref,     # (3*W*Cout, W*Cout)  bf16 conv2*s2
                        b2_ref,     # (1, W*Cout)         f32  bn2 bias + bn_s bias
                        out_ref):   # (Nb, H, W*Cout)
    Nb, H, K1 = x_ref.shape
    WCo = w2_ref.shape[1]
    M = Nb * H

    # ---- conv1+bn1 and shortcut conv+bn fused into ONE MXU matmul -----------
    # K = 3*W*Cin, N = 2*W*Cout (conv1 columns | shortcut columns).
    lhs1 = x_ref[...].reshape(M, K1)                                    # bf16
    r1 = jnp.dot(lhs1, w1_ref[...], preferred_element_type=jnp.float32)  # (M, 2*WCo)
    h1 = jnp.maximum(r1[:, :WCo] + b1_ref[...], 0.0)    # relu(bn1(conv1(x)))
    sc = r1[:, WCo:]                                    # bn_s(conv_s(x)) - bias
    # dropout p=0.0 -> identity.

    # ---- conv2+bn2: 3-row-window im2col of h1 built in registers ------------
    # (no VMEM scratch, no halo-row stores, no misaligned slice reshapes).
    h1_3d = h1.reshape(Nb, H, WCo)
    zrow = jnp.zeros((Nb, 1, WCo), jnp.float32)
    up = jnp.concatenate([zrow, h1_3d[:, :H - 1, :]], axis=1)  # h1[h-1], 0 at h=0
    dn = jnp.concatenate([h1_3d[:, 1:, :], zrow], axis=1)      # h1[h+1], 0 at h=H-1
    im2 = jnp.concatenate([up, h1_3d, dn], axis=-1)            # (Nb, H, 3*WCo)
    im2 = im2.reshape(M, 3 * WCo).astype(jnp.bfloat16)         # single activation cast

    r2 = jnp.dot(im2, w2_ref[...], preferred_element_type=jnp.float32)   # (M, WCo)
    # dropout p=0.0 -> identity.

    # ---- residual add + relu, lane-dense (128-wide) store --------------------
    out = jnp.maximum(r2 + sc + b2_ref[...], 0.0)
    out_ref[...] = out.reshape(Nb, H, WCo).astype(out_ref.dtype)


# ----------------------------------------------------------------------------
# Wrapper
# ----------------------------------------------------------------------------
def _pick_batch_block(n, h, m_target=256, m_cap=1024):
    """Pick Nb so M = Nb*H fills the MXU (>=256 rows) when the batch allows it.

    Preference order:
      1) smallest divisor of n reaching m_target while leaving >= 2 grid steps
         (keeps both v7x TensorCores busy),
      2) smallest divisor reaching m_target at all,
      3) tiny problems: maximize M (whole batch in one step) within the cap.
    """
    divs = [d for d in range(1, n + 1) if n % d == 0]
    for d in divs:
        if d * h >= m_target and d * h <= m_cap and n // d >= 2:
            return d
    for d in divs:
        if d * h >= m_target and d * h <= m_cap:
            return d
    fits = [d for d in divs if d * h <= m_cap]
    return max(fits) if fits else 1


def basic_block_pallas(x_nchw, kparams, *, batch_block=None, out_dtype=jnp.float32):
    """x_nchw: (N, Cin, H, W) float32.  kparams from prepare_block_params.
    Returns (N, Cout, H, W) float32 (computed in out_dtype inside the kernel)."""
    w1c, b1t, w2s, bsum = kparams
    N, Cin, H, W = x_nchw.shape
    WCi = W * Cin
    K1 = 3 * WCi
    WCo = w2s.shape[1]
    Cout = WCo // W
    assert w1c.shape == (K1, 2 * WCo) and w2s.shape == (3 * WCo, WCo)

    # NCHW -> lane-dense bf16 rows (N, H, W*Cin), then 3-row-window im2col
    # (N, H, 3*W*Cin).  Fused with the unavoidable NCHW->NHWC relayout; column
    # padding lives inside the Toeplitz weights, row padding in the zero rows.
    xr = jnp.transpose(x_nchw, (0, 2, 3, 1)).reshape(N, H, WCi).astype(jnp.bfloat16)
    zrow = jnp.zeros((N, 1, WCi), jnp.bfloat16)
    up = jnp.concatenate([zrow, xr[:, :H - 1]], axis=1)
    dn = jnp.concatenate([xr[:, 1:], zrow], axis=1)
    xr3 = jnp.concatenate([up, xr, dn], axis=-1)                 # (N, H, 3*W*Cin)

    Nb = batch_block if batch_block is not None else _pick_batch_block(N, H)
    assert N % Nb == 0
    grid = (N // Nb,)

    full = lambda s: pl.BlockSpec(s, lambda n: (0,) * len(s))

    out_isize = int(jnp.dtype(out_dtype).itemsize)
    flops = 2 * N * H * (K1 * 2 * WCo + 3 * WCo * WCo)
    bytes_accessed = int(xr3.size * 2 + N * H * WCo * out_isize
                         + (w1c.size + w2s.size) * 2
                         + (b1t.size + bsum.size) * 4)

    # Scoped-VMEM budget: double-buffered activation/output blocks + resident
    # weights, with slack.  Clamped to <= 48 MiB so the same config also fits
    # v7x's 64 MiB physical VMEM (v5e/v6e have 128 MiB physical).
    step_bytes = (2 * Nb * H * K1 * 2 + 2 * Nb * H * WCo * out_isize
                  + (w1c.size + w2s.size) * 2 + (b1t.size + bsum.size) * 4)
    vmem_limit = int(min(max(4 * step_bytes + (8 << 20), 32 << 20), 48 << 20))

    out = pl.pallas_call(
        _basic_block_kernel,
        out_shape=jax.ShapeDtypeStruct((N, H, WCo), out_dtype),
        grid_spec=pltpu.PrefetchScalarGridSpec(
            num_scalar_prefetch=0,
            grid=grid,
            in_specs=[
                pl.BlockSpec((Nb, H, K1), lambda n: (n, 0, 0)),   # im2col'd x (bf16)
                full((K1, 2 * WCo)),                              # conv1*s1 | shortcut*ss
                full((1, WCo)),                                   # bn1 bias
                full((3 * WCo, WCo)),                             # conv2*s2
                full((1, WCo)),                                   # bn2 bias + bn_s bias
            ],
            out_specs=pl.BlockSpec((Nb, H, WCo), lambda n: (n, 0, 0)),
        ),
        compiler_params=pltpu.CompilerParams(
            dimension_semantics=("parallel",),
            vmem_limit_bytes=vmem_limit),
        cost_estimate=pl.CostEstimate(
            flops=flops, transcendentals=0, bytes_accessed=bytes_accessed),
    )(xr3, w1c, b1t, w2s, bsum)

    # (N, H, W*Cout) -> (N, Cout, H, W); the reshape is layout-free.
    return jnp.transpose(out.astype(jnp.float32).reshape(N, H, W, Cout), (0, 3, 1, 2))


# ----------------------------------------------------------------------------
# Parameter preparation (one-time, host side)
# ----------------------------------------------------------------------------
def fold_bn(gamma, beta, mean, var, eps=1e-5):
    scale = gamma / jnp.sqrt(var + eps)
    bias = beta - mean * scale
    return scale, bias


def _toeplitz_stack(w3, W):
    """(3, 3, Ci, Co) 3x3 conv weight -> (3*W*Ci, W*Co) stacked row-Toeplitz (f32).

    Row index = dy*(W*Ci) + c*Ci + ci, column = j*Co + co; entry = w3[dy, c-j+1]
    when 0 <= c-j+1 <= 2, else 0 -> implements padding=1 along W implicitly.
    """
    w = np.asarray(w3, np.float32)
    _, _, Ci, Co = w.shape
    T = np.zeros((3, W, Ci, W, Co), np.float32)
    for dy in range(3):
        for dx in range(3):
            for j in range(W):
                c = j + dx - 1
                if 0 <= c < W:
                    T[dy, c, :, j, :] = w[dy, dx]
    return T.reshape(3 * W * Ci, W * Co)


def _shortcut_stack(ws, W):
    """(Ci, Co) 1x1 conv weight -> (3*W*Ci, W*Co): block-diag in the dy=1 rows."""
    w = np.asarray(ws, np.float32)
    Ci, Co = w.shape
    S = np.zeros((3, W, Ci, W, Co), np.float32)
    for j in range(W):
        S[1, j, :, j, :] = w
    return S.reshape(3 * W * Ci, W * Co)


def prepare_block_params(raw_params, W):
    """Fold BN scales into the (bf16) matmul weights and merge biases.

    Returns (w1_combined, b1_tiled, w2_stacked, bias_sum_tiled).
    """
    w1, (s1, b1), w2, (s2, b2), ws, (ss, bs) = raw_params
    s1 = np.asarray(s1, np.float32); b1 = np.asarray(b1, np.float32)
    s2 = np.asarray(s2, np.float32); b2 = np.asarray(b2, np.float32)
    ss = np.asarray(ss, np.float32); bs = np.asarray(bs, np.float32)

    t1 = _toeplitz_stack(w1, W) * np.tile(s1, W)[None, :]     # conv1 * s1
    tsc = _shortcut_stack(ws, W) * np.tile(ss, W)[None, :]    # shortcut * ss
    w1c = jnp.asarray(np.concatenate([t1, tsc], axis=1), jnp.bfloat16)   # (3*WCi, 2*WCo)

    t2 = _toeplitz_stack(w2, W) * np.tile(s2, W)[None, :]     # conv2 * s2
    w2s = jnp.asarray(t2, jnp.bfloat16)                       # (3*WCo, WCo)

    b1t = jnp.asarray(np.tile(b1, W)[None, :], jnp.float32)          # (1, WCo)
    bsum = jnp.asarray(np.tile(b2 + bs, W)[None, :], jnp.float32)    # (1, WCo)
    return (w1c, b1t, w2s, bsum)


def make_params(key, Cin, Cout):
    ks = jax.random.split(key, 6)
    w1 = 0.1 * jax.random.normal(ks[0], (3, 3, Cin, Cout), jnp.float32)
    w2 = 0.1 * jax.random.normal(ks[1], (3, 3, Cout, Cout), jnp.float32)
    ws = 0.1 * jax.random.normal(ks[2], (Cin, Cout), jnp.float32)

    def bn(k):
        a, b, c, d = jax.random.split(k, 4)
        gamma = 1.0 + 0.1 * jax.random.normal(a, (Cout,), jnp.float32)
        beta = 0.1 * jax.random.normal(b, (Cout,), jnp.float32)
        mean = 0.1 * jax.random.normal(c, (Cout,), jnp.float32)
        var = jnp.abs(1.0 + 0.1 * jax.random.normal(d, (Cout,), jnp.float32))
        return fold_bn(gamma, beta, mean, var)

    return (w1, bn(ks[3]), w2, bn(ks[4]), ws, bn(ks[5]))


# ----------------------------------------------------------------------------
# Pure-JAX reference (lax.conv), f32 throughout
# ----------------------------------------------------------------------------
def basic_block_ref(x_nchw, raw_params):
    w1, (s1, b1), w2, (s2, b2), ws, (ss, bs) = raw_params
    x = jnp.transpose(x_nchw, (0, 2, 3, 1))
    dn = ('NHWC', 'HWIO', 'NHWC')
    c1 = lax.conv_general_dilated(x, w1, (1, 1), 'SAME', dimension_numbers=dn)
    o1 = jnp.maximum(c1 * s1 + b1, 0.0)
    c2 = lax.conv_general_dilated(o1, w2, (1, 1), 'SAME', dimension_numbers=dn)
    o2 = c2 * s2 + b2
    cs = lax.conv_general_dilated(x, ws.reshape(1, 1, *ws.shape), (1, 1), 'SAME',
                                  dimension_numbers=dn)
    sc = cs * ss + bs
    out = jnp.maximum(o2 + sc, 0.0)
    return jnp.transpose(out, (0, 3, 1, 2))


if __name__ == "__main__":
    N, Cin, Cout, H, W = 2, 4, 8, 16, 16
    key = jax.random.PRNGKey(0)
    kx, kp = jax.random.split(key)
    x = jax.random.normal(kx, (N, Cin, H, W), jnp.float32)

    raw_params = make_params(kp, Cin, Cout)
    kparams = prepare_block_params(raw_params, W)

    out = jax.block_until_ready(basic_block_pallas(x, kparams))
    ref = jax.block_until_ready(basic_block_ref(x, raw_params))

    assert out.shape == (N, Cout, H, W)
    # Kernel matmul inputs are bf16 (activations + BN-folded weights); compare
    # to the f32 lax.conv reference with a bf16-appropriate tolerance.
    assert jnp.allclose(out, ref, rtol=2e-2, atol=2e-2), "mismatch vs JAX reference"

    print("KERNEL_OK")
</pallas_src>

<mosaic_0001>
module attributes {stable_mosaic.version = 11 : i64} {
  func.func @_basic_block_kernel(%arg0: i32, %arg1: memref<2x16x192xbf16, #tpu.memory_space<vmem>>, %arg2: memref<192x256xbf16, #tpu.memory_space<vmem>>, %arg3: memref<1x128xf32, #tpu.memory_space<vmem>>, %arg4: memref<384x128xbf16, #tpu.memory_space<vmem>>, %arg5: memref<1x128xf32, #tpu.memory_space<vmem>>, %arg6: memref<2x16x128xf32, #tpu.memory_space<vmem>>) attributes {dimension_semantics = [#tpu.dimension_semantics<parallel>], iteration_bounds = array<i64: 1>, scalar_prefetch = 0 : i64, scratch_operands = 0 : i64, tpu.core_type = #tpu.core_type<tc>, window_params = [{transform_indices = @transform_0, window_bounds = array<i64: 2, 16, 192>}, {pipeline_mode = #tpu.pipeline_mode<synchronous>, transform_indices = @transform_1, window_bounds = array<i64: 192, 256>}, {pipeline_mode = #tpu.pipeline_mode<synchronous>, transform_indices = @transform_2, window_bounds = array<i64: 1, 128>}, {pipeline_mode = #tpu.pipeline_mode<synchronous>, transform_indices = @transform_3, window_bounds = array<i64: 384, 128>}, {pipeline_mode = #tpu.pipeline_mode<synchronous>, transform_indices = @transform_4, window_bounds = array<i64: 1, 128>}, {transform_indices = @transform_5, window_bounds = array<i64: 2, 16, 128>}]} {
    %c0 = arith.constant 0 : index
    %c0_0 = arith.constant 0 : index
    %c0_1 = arith.constant 0 : index
    %0 = vector.load %arg1[%c0, %c0_0, %c0_1] : memref<2x16x192xbf16, #tpu.memory_space<vmem>>, vector<2x16x192xbf16>
    %1 = vector.shape_cast %0 : vector<2x16x192xbf16> to vector<32x192xbf16>
    %c0_2 = arith.constant 0 : index
    %c0_3 = arith.constant 0 : index
    %2 = vector.load %arg2[%c0_2, %c0_3] : memref<192x256xbf16, #tpu.memory_space<vmem>>, vector<192x256xbf16>
    %cst = arith.constant dense<0.000000e+00> : vector<32x256xf32>
    %3 = tpu.matmul %1, %2, %cst {dimension_numbers = #tpu.dot_dimension_numbers<[1], [0], [0], [1], [0, 0, 1, 1], [], []>} : vector<32x192xbf16>, vector<192x256xbf16>, vector<32x256xf32> -> vector<32x256xf32>
    %4 = vector.extract_strided_slice %3 {offsets = [0, 0], sizes = [32, 128], strides = [1, 1]} : vector<32x256xf32> to vector<32x128xf32>
    %c0_4 = arith.constant 0 : index
    %c0_5 = arith.constant 0 : index
    %5 = vector.load %arg3[%c0_4, %c0_5] : memref<1x128xf32, #tpu.memory_space<vmem>>, vector<1x128xf32>
    %6 = vector.broadcast %5 : vector<1x128xf32> to vector<32x128xf32>
    %7 = arith.addf %4, %6 : vector<32x128xf32>
    %cst_6 = arith.constant 0.000000e+00 : f32
    %8 = vector.broadcast %cst_6 : f32 to vector<32x128xf32>
    %9 = arith.maximumf %7, %8 : vector<32x128xf32>
    %10 = vector.extract_strided_slice %3 {offsets = [0, 128], sizes = [32, 128], strides = [1, 1]} : vector<32x256xf32> to vector<32x128xf32>
    %11 = vector.shape_cast %9 : vector<32x128xf32> to vector<2x16x128xf32>
    %cst_7 = arith.constant 0.000000e+00 : f32
    %12 = vector.broadcast %cst_7 : f32 to vector<2x1x128xf32>
    %13 = vector.extract_strided_slice %11 {offsets = [0, 0, 0], sizes = [2, 15, 128], strides = [1, 1, 1]} : vector<2x16x128xf32> to vector<2x15x128xf32>
    %14 = tpu.concatenate %12, %13 in 1 : vector<2x1x128xf32>, vector<2x15x128xf32> -> vector<2x16x128xf32>
    %15 = vector.extract_strided_slice %11 {offsets = [0, 1, 0], sizes = [2, 15, 128], strides = [1, 1, 1]} : vector<2x16x128xf32> to vector<2x15x128xf32>
    %16 = tpu.concatenate %15, %12 in 1 : vector<2x15x128xf32>, vector<2x1x128xf32> -> vector<2x16x128xf32>
    %17 = tpu.concatenate %14, %11, %16 in 2 : vector<2x16x128xf32>, vector<2x16x128xf32>, vector<2x16x128xf32> -> vector<2x16x384xf32>
    %18 = vector.shape_cast %17 : vector<2x16x384xf32> to vector<32x384xf32>
    %19 = arith.truncf %18 : vector<32x384xf32> to vector<32x384xbf16>
    %c0_8 = arith.constant 0 : index
    %c0_9 = arith.constant 0 : index
    %20 = vector.load %arg4[%c0_8, %c0_9] : memref<384x128xbf16, #tpu.memory_space<vmem>>, vector<384x128xbf16>
    %cst_10 = arith.constant dense<0.000000e+00> : vector<32x128xf32>
    %21 = tpu.matmul %19, %20, %cst_10 {dimension_numbers = #tpu.dot_dimension_numbers<[1], [0], [0], [1], [0, 0, 1, 1], [], []>} : vector<32x384xbf16>, vector<384x128xbf16>, vector<32x128xf32> -> vector<32x128xf32>
    %22 = arith.addf %21, %10 : vector<32x128xf32>
    %c0_11 = arith.constant 0 : index
    %c0_12 = arith.constant 0 : index
    %23 = vector.load %arg5[%c0_11, %c0_12] : memref<1x128xf32, #tpu.memory_space<vmem>>, vector<1x128xf32>
    %24 = vector.broadcast %23 : vector<1x128xf32> to vector<32x128xf32>
    %25 = arith.addf %22, %24 : vector<32x128xf32>
    %cst_13 = arith.constant 0.000000e+00 : f32
    %26 = vector.broadcast %cst_13 : f32 to vector<32x128xf32>
    %27 = arith.maximumf %25, %26 : vector<32x128xf32>
    %28 = vector.shape_cast %27 : vector<32x128xf32> to vector<2x16x128xf32>
    %c0_14 = arith.constant 0 : index
    %c0_15 = arith.constant 0 : index
    %c0_16 = arith.constant 0 : index
    %29 = vector.load %arg6[%c0_14, %c0_15, %c0_16] : memref<2x16x128xf32, #tpu.memory_space<vmem>>, vector<2x16x128xf32>
    tpu.vector_store %arg6[%c0_14, %c0_15, %c0_16], %28 {strides = array<i32>} : memref<2x16x128xf32, #tpu.memory_space<vmem>>, vector<2x16x128xf32>,
    return
  }
  func.func @transform_0(%arg0: i32) -> (i32, i32, i32) {
    %c0_i32 = arith.constant 0 : i32
    %c0_i32_0 = arith.constant 0 : i32
    %c0_i32_1 = arith.constant 0 : i32
    return %arg0, %c0_i32, %c0_i32_0 : i32, i32, i32
  }
  func.func @transform_1(%arg0: i32) -> (i32, i32) {
    %c0_i32 = arith.constant 0 : i32
    %c0_i32_0 = arith.constant 0 : i32
    %c0_i32_1 = arith.constant 0 : i32
    return %c0_i32, %c0_i32_0 : i32, i32
  }
  func.func @transform_2(%arg0: i32) -> (i32, i32) {
    %c0_i32 = arith.constant 0 : i32
    %c0_i32_0 = arith.constant 0 : i32
    %c0_i32_1 = arith.constant 0 : i32
    return %c0_i32, %c0_i32_0 : i32, i32
  }
  func.func @transform_3(%arg0: i32) -> (i32, i32) {
    %c0_i32 = arith.constant 0 : i32
    %c0_i32_0 = arith.constant 0 : i32
    %c0_i32_1 = arith.constant 0 : i32
    return %c0_i32, %c0_i32_0 : i32, i32
  }
  func.func @transform_4(%arg0: i32) -> (i32, i32) {
    %c0_i32 = arith.constant 0 : i32
    %c0_i32_0 = arith.constant 0 : i32
    %c0_i32_1 = arith.constant 0 : i32
    return %c0_i32, %c0_i32_0 : i32, i32
  }
  func.func @transform_5(%arg0: i32) -> (i32, i32, i32) {
    %c0_i32 = arith.constant 0 : i32
    %c0_i32_0 = arith.constant 0 : i32
    %c0_i32_1 = arith.constant 0 : i32
    return %arg0, %c0_i32, %c0_i32_0 : i32, i32, i32
  }
}

</mosaic_0001>

<bundles_post_ra>
// kernel: tpu_custom_call.1
= control target key start
LH: loop header
LB: loop body
LE: loop exit
PB: predicated region body
PF: predicated region fallthrough
CT: control target
= control target key end

     0   :  { %10 = vsyncpa [#allocation3], 0  ;;  %s1108_s0 = inlined_call_operand.hbm [shape: bf16[2,16,192], index: 0, kind: input, shape index: {}]   ;;  %s1109_s1 = inlined_call_operand.hbm [shape: bf16[192,256], index: 1, kind: input, shape index: {}]   ;;  %s1110_s2 = inlined_call_operand.vmem [shape: f32[1,128], index: 2, kind: input, shape index: {}]   ;;  %s1111_s3 = inlined_call_operand.hbm [shape: bf16[384,128], index: 3, kind: input, shape index: {}]   ;;  %s1112_s4 = inlined_call_operand.vmem [shape: f32[1,128], index: 4, kind: input, shape index: {}]   ;;  %s1113_s5 = inlined_call_operand.hbm [shape: f32[2,16,128], index: 5, kind: output, shape index: {}]  }
   0x1   :  { %11 = vsyncpa [#allocation6], 0 }
   0x2   :  { %12 = vsyncpa [#allocation4], 0  ;;  %s964_s18 = smov [#allocation5]   ;;  %s965_s20 = smov [#allocation2]  }
   0x3   :  { %s30_s19 = sshll.u32 %s964_s18, 4  ;;  %s18_s21 = sshll.u32 %s965_s20, 4  ;;  %s31_s19 = int_to_ptr.vmem [resolvable:$true] %s30_s19  ;;  %s1003_s21 = int_to_ptr.vmem [resolvable:$true] %s18_s21 }
   0x4   :  { %s870_s24 = scalar_lea.hbm %s1109_s1, 3072 }
   0x5   :  { %p871_p0 = scmp.ne.s32.totalorder %s1109_s1, %s870_s24  ;;  %p874_p1 = scmp.lt.u32.totalorder %s870_s24, %s1109_s1 }
   0x7   :  { %p876_p2 = pnand %p874_p1, %p871_p0 }
   0x9   :  { %879 = shalt.err (!%p876_p2)
}
   0xa   :  { %s880_s29 = scalar_lea.vmem %s31_s19, 3072  ;;  %p885_p4 = scmp.lt.s32.totalorder %s31_s19, %s31_s19 }
   0xb   :  { %p881_p3 = scmp.ne.s32.totalorder %s31_s19, %s880_s29  ;;  %p886_p5 = scmp.lt.s32.totalorder %s880_s29, %s880_s29 }
   0xd   :  { %p887_p6 = por %p886_p5, %p885_p4 }
   0xf   :  { %p888_p7 = pnand %p887_p6, %p881_p3 }
  0x11   :  { %891 = shalt.err (!%p888_p7)
}
  0x12   :  { %s966_s30 = smov 128   ;;  %s967_s6 = smov 8  }
  0x13   :  { %36 = dma.hbm_to_vmem [thread:$0]  %s1109_s1, 3072, %s31_s19, [#allocation6], %s966_s30, %s966_s30, %s967_s6  }
  0x14   :  { %s892_s11 = scalar_lea.hbm %s1108_s0, 512 }
  0x15   :  { %p893_p8 = scmp.ne.s32.totalorder %s1108_s0, %s892_s11  ;;  %p896_p9 = scmp.lt.u32.totalorder %s892_s11, %s1108_s0 }
  0x17   :  { %p898_p10 = pnand %p896_p9, %p893_p8 }
  0x19   :  { %901 = shalt.err (!%p898_p10)
}
  0x1a   :  { %s902_s16 = scalar_lea.vmem %s1003_s21, 512  ;;  %p907_p12 = scmp.lt.s32.totalorder %s1003_s21, %s1003_s21 }
  0x1b   :  { %p903_p11 = scmp.ne.s32.totalorder %s1003_s21, %s902_s16  ;;  %p908_p13 = scmp.lt.s32.totalorder %s902_s16, %s902_s16 }
  0x1d   :  { %p909_p0 = por %p908_p13, %p907_p12 }
  0x1f   :  { %p910_p1 = pnand %p909_p0, %p903_p11 }
  0x21   :  { %913 = shalt.err (!%p910_p1)
}
  0x22   :  { %24 = dma.hbm_to_vmem [thread:$0]  %s1108_s0, 512, %s1003_s21, [#allocation3], %s966_s30, %s966_s30, %s967_s6  }
  0x23   :  { %s968_s18 = smov [#allocation7]   ;;  %s914_s23 = scalar_lea.hbm %s1111_s3, 3072 }
  0x24   :  { %s44_s19 = sshll.u32 %s968_s18, 4  ;;  %p915_p2 = scmp.ne.s32.totalorder %s1111_s3, %s914_s23  ;;  %s45_s19 = int_to_ptr.vmem [resolvable:$true] %s44_s19 }
  0x25   :  { %p918_p3 = scmp.lt.u32.totalorder %s914_s23, %s1111_s3 }
  0x27   :  { %p920_p4 = pnand %p918_p3, %p915_p2 }
  0x29   :  { %923 = shalt.err (!%p920_p4)
}
  0x2a   :  { %s924_s28 = scalar_lea.vmem %s45_s19, 3072  ;;  %p929_p6 = scmp.lt.s32.totalorder %s45_s19, %s45_s19 }
  0x2b   :  { %p925_p5 = scmp.ne.s32.totalorder %s45_s19, %s924_s28  ;;  %p930_p7 = scmp.lt.s32.totalorder %s924_s28, %s924_s28 }
  0x2d   :  { %p931_p8 = por %p930_p7, %p929_p6 }
  0x2f   :  { %p932_p9 = pnand %p931_p8, %p925_p5 }
  0x31   :  { %935 = shalt.err (!%p932_p9)
}
  0x32   :  { %s969_s0 = smov 64   ;;  %s970_s21 = smov 4  }
  0x33   :  { %50 = dma.hbm_to_vmem [thread:$0]  %s1111_s3, 3072, %s45_s19, [#allocation6], %s969_s0, %s969_s0, %s970_s21  }
  0x34   :  { %958 = dma.done.wait [#allocation3], 512  }
  0x35   :  { %959 = vsyncadd [#allocation3], 4294966784 }
  0x36   :  { %960 = dma.done.wait [#allocation6], 6144  }
  0x37   :  { %961 = vsyncadd [#allocation6], 4294961152  ;;  %v804_v0 = vld [vmem:[#allocation5 + $0x4] ss:$8 sps:$4 sm:$0xff]   ;;  %v806_v1 = vld [vmem:[#allocation5] ss:$8 sps:$4 sm:$0xff]  }
  0x38   :  { %236 = vmatprep.subr.bf16.mxu0 %v804_v0  ;;  %v807_v2 = vld [vmem:[#allocation5 + $0x14] ss:$8 sps:$4 sm:$0xff]   ;;  %v809_v3 = vld [vmem:[#allocation5 + $0x10] ss:$8 sps:$4 sm:$0xff]   ;;  %v810_v4 = vld [vmem:[#allocation5 + $0x24] ss:$8 sps:$4 sm:$0xff]  }
  0x39   :  { %237 = vmatpush1.bf16.msra.mxu0 %v806_v1  ;;  %v812_v5 = vld [vmem:[#allocation5 + $0x20] ss:$8 sps:$4 sm:$0xff]   ;;  %v813_v6 = vld [vmem:[#allocation5 + $0x34] ss:$8 sps:$4 sm:$0xff]   ;;  %v815_v7 = vld [vmem:[#allocation5 + $0x30] ss:$8 sps:$4 sm:$0xff]  }
  0x3a   :  { %238 = vmatprep.subr.bf16.mxu0 %v807_v2  ;;  %v816_v8 = vld [vmem:[#allocation5 + $0x44] ss:$8 sps:$4 sm:$0xff]   ;;  %v818_v9 = vld [vmem:[#allocation5 + $0x40] ss:$8 sps:$4 sm:$0xff]   ;;  %v819_v10 = vld [vmem:[#allocation5 + $0x54] ss:$8 sps:$4 sm:$0xff]  }
  0x3b   :  { %vm229_vm0 = vcmask 523264   ;;  %v842_v11 = vld [vmem:[#allocation2 + $0x4] ss:$8 sps:$4 sm:$0xff]   ;;  %v821_v12 = vld [vmem:[#allocation5 + $0x50] ss:$8 sps:$4 sm:$0xff]   ;;  %vm308_vm1 = vcmask 1040384  }
  0x3c   :  { %v822_v13 = vld [vmem:[#allocation5 + $0x64] ss:$8 sps:$4 sm:$0xff]   ;;  %695 = vmatprep.mubr.msk.bf16.mxu0 %vm229_vm0, %v842_v11  ;;  %v824_v16 = vld [vmem:[#allocation5 + $0x60] ss:$8 sps:$4 sm:$0xff]   ;;  %v850_v19 = vld [vmem:[#allocation7 + $0x50] sm:$0xff]   ;;  %vm321_vm3 = vcmask 1046528  }
  0x3d   :  { %239 = vmatpush1.bf16.msra.mxu0 %v809_v3  ;;  %v846_v14 = vld [vmem:[#allocation7 + $0x40] sm:$0xff]   ;;  %v848_v17 = vld [vmem:[#allocation7 + $0x48] sm:$0xff]   ;;  %v825_v20 = vld [vmem:[#allocation5 + $0x74] ss:$8 sps:$4 sm:$0xff]   ;;  %vm971_vm4 = vmmov 1   ;;  %s972_s10 = smov [#allocation8]  }
  0x3e   :  { %240 = vmatprep.subr.bf16.mxu0 %v810_v4  ;;  %v847_v15 = vld [vmem:[#allocation7] sm:$0xff]   ;;  %737 = vmatprep.subr.bf16.mxu1 %v846_v14  ;;  %v849_v18 = vld [vmem:[#allocation7 + $0x8] sm:$0xff]   ;;  %v827_v21 = vld [vmem:[#allocation5 + $0x70] ss:$8 sps:$4 sm:$0xff]   ;;  %s654_s11 = sshll.u32 %s972_s10, 4  ;;  %s655_s11 = int_to_ptr.vmem [resolvable:$true] %s654_s11 }
  0x3f   :  { %738 = vmatpush3.bf16.msra.mxu1 %v847_v15  ;;  %v828_v22 = vld [vmem:[#allocation5 + $0x84] ss:$8 sps:$4 sm:$0xff]   ;;  %v851_v23 = vld [vmem:[#allocation7 + $0x10] sm:$0xff]   ;;  %v852_v24 = vld [vmem:[#allocation7 + $0x58] sm:$0xff]   ;;  %p941_p11 = scmp.lt.s32.totalorder %s655_s11, %s655_s11 }
  0x40   :  { %739 = vmatprep.subr.bf16.mxu1 %v848_v17  ;;  %v853_v25 = vld [vmem:[#allocation7 + $0x18] sm:$0xff]   ;;  %v830_v26 = vld [vmem:[#allocation5 + $0x80] ss:$8 sps:$4 sm:$0xff]   ;;  %v834_v32 = vld [vmem:[#allocation5 + $0xa4] ss:$8 sps:$4 sm:$0xff]  }
  0x41   :  { %241 = vmatpush1.bf16.msra.mxu0 %v812_v5  ;;  %v854_v27 = vld [vmem:[#allocation7 + $0x60] sm:$0xff]   ;;  %v831_v28 = vld [vmem:[#allocation5 + $0x94] ss:$8 sps:$4 sm:$0xff]   ;;  %v833_v30 = vld [vmem:[#allocation5 + $0x90] ss:$8 sps:$4 sm:$0xff]  }
  0x42   :  { %242 = vmatprep.subr.bf16.mxu0 %v813_v6  ;;  %v855_v29 = vld [vmem:[#allocation7 + $0x20] sm:$0xff]   ;;  %v856_v31 = vld [vmem:[#allocation7 + $0x68] sm:$0xff]   ;;  %v837_v34 = vld [vmem:[#allocation5 + $0xb4] ss:$8 sps:$4 sm:$0xff]  }
  0x43   :  { %740 = vmatpush3.bf16.msra.mxu1 %v849_v18  ;;  %v836_v33 = vld [vmem:[#allocation5 + $0xa0] ss:$8 sps:$4 sm:$0xff]   ;;  %v839_v35 = vld [vmem:[#allocation5 + $0xb0] ss:$8 sps:$4 sm:$0xff]   ;;  %v843_v37 = vld [vmem:[#allocation2 + $0x14] ss:$8 sps:$4 sm:$0xff]  }
  0x44   :  { %741 = vmatprep.subr.bf16.mxu1 %v850_v19  ;;  %v840_v36 = vld [vmem:[#allocation2] ss:$8 sps:$4 sm:$0xff]   ;;  %v845_v38 = vld [vmem:[#allocation2 + $0x10] ss:$8 sps:$4 sm:$0xff]   ;;  %vm722_vm2 = vmneg %vm308_vm1 }
  0x45   :  { %243 = vmatpush1.bf16.msra.mxu0 %v815_v7  ;;  %v857_v39 = vld [vmem:[#allocation7 + $0x28] sm:$0xff]   ;;  %v858_v40 = vld [vmem:[#allocation7 + $0x70] sm:$0xff]   ;;  %v860_v42 = vld [vmem:[#allocation7 + $0x78] sm:$0xff]  }
  0x46   :  { %244 = vmatprep.subr.bf16.mxu0 %v816_v8  ;;  %v859_v41 = vld [vmem:[#allocation7 + $0x30] sm:$0xff]   ;;  %v861_v43 = vld [vmem:[#allocation7 + $0x38] sm:$0xff]   ;;  %v862_v44 = vld [vmem:[#allocation7 + $0x80] sm:$0xff]  }
  0x47   :  { %742 = vmatpush3.bf16.msra.mxu1 %v851_v23  ;;  %v697_v45 = vld [vmem:[%s1110_s2] ss:$0 sm:$0xff]  ;;  %vm1066_vm5 = vmpackc.low %vm971_vm4, %vm722_vm2  ;;  %v863_v3 = vld [vmem:[#allocation7 + $0x88] sm:$0xff]  }
  0x48   :  { %743 = vmatprep.subr.bf16.mxu1 %v852_v24  ;;  %v864_v11 = vld [vmem:[#allocation7 + $0x90] sm:$0xff]   ;;  %vm1077_vm6 = vmpackc.low %vm321_vm3, %vm971_vm4  ;;  %v869_v24 = vld [vmem:[#allocation7 + $0xb8] sm:$0xff]  }
  0x49   :  { %245 = vmatpush1.bf16.msra.mxu0 %v818_v9  ;;  %v868_v23 = vld [vmem:[#allocation7 + $0xb0] sm:$0xff]  }
  0x4a   :  { %246 = vmatprep.subr.bf16.mxu0 %v819_v10 }
  0x4b   :  { %744 = vmatpush3.bf16.msra.mxu1 %v853_v25 }
  0x4c   :  { %745 = vmatprep.subr.bf16.mxu1 %v854_v27 }
  0x4d   :  { %247 = vmatpush1.bf16.msra.mxu0 %v821_v12 }
  0x4e   :  { %248 = vmatprep.subr.bf16.mxu0 %v822_v13 }
  0x4f   :  { %746 = vmatpush3.bf16.msra.mxu1 %v855_v29 }
  0x50   :  { %747 = vmatprep.subr.bf16.mxu1 %v856_v31 }
  0x51   :  { %249 = vmatpush1.bf16.msra.mxu0 %v824_v16 }
  0x52   :  { %250 = vmatprep.subr.bf16.mxu0 %v825_v20  ;;  %v865_v20 = vld [vmem:[#allocation7 + $0x98] sm:$0xff]  }
  0x53   :  { %748 = vmatpush3.bf16.msra.mxu1 %v857_v39 }
  0x54   :  { %749 = vmatprep.subr.bf16.mxu1 %v858_v40 }
  0x55   :  { %251 = vmatpush1.bf16.msra.mxu0 %v827_v21  ;;  %v866_v21 = vld [vmem:[#allocation7 + $0xa0] sm:$0xff]  }
  0x56   :  { %252 = vmatprep.subr.bf16.mxu0 %v828_v22  ;;  %v867_v22 = vld [vmem:[#allocation7 + $0xa8] sm:$0xff]  }
  0x57   :  { %750 = vmatpush3.bf16.msra.mxu1 %v859_v41 }
  0x58   :  { %751 = vmatprep.subr.bf16.mxu1 %v860_v42  ;;  %v736_v42 = vld [vmem:[%s1112_s4] ss:$0 sm:$0xff]  ;;  %s936_s4 = scalar_lea.vmem %s655_s11, 512 }
  0x59   :  { %253 = vmatpush1.bf16.msra.mxu0 %v830_v26  ;;  %p937_p10 = scmp.ne.s32.totalorder %s655_s11, %s936_s4  ;;  %p942_p12 = scmp.lt.s32.totalorder %s936_s4, %s936_s4 }
  0x5a   :  { %254 = vmatprep.subr.bf16.mxu0 %v831_v28 }
  0x5b   :  { %752 = vmatpush3.bf16.msra.mxu1 %v861_v43  ;;  %p943_p13 = por %p942_p12, %p941_p11 }
  0x5c   :  { %775 = vmatprep.subr.bf16.mxu1 %v862_v44 }
  0x5d   :  { %255 = vmatpush1.bf16.msra.mxu0 %v833_v30  ;;  %p944_p0 = pnand %p943_p13, %p937_p10 }
  0x5e   :  { %256 = vmatprep.subr.bf16.mxu0 %v834_v32 }
  0x61   :  { %257 = vmatpush1.bf16.msra.mxu0 %v836_v33 }
  0x62   :  { %258 = vmatprep.subr.bf16.mxu0 %v837_v34 }
  0x65   :  { %259 = vmatpush1.bf16.msra.mxu0 %v839_v35 }
  0x68   :  { %269 = vmatmul.mubr.bf16.vlgmr.msra.gmra.mrb[0].mxu0 %v840_v36 }
  0x69   :  { %696 = vmatprep.mubr.msk.bf16.mxu0 %vm229_vm0, %v843_v37 }
  0x70   :  { %279 = vmatmul.mubr.bf16.gmra.mrb[4].mxu0 %v845_v38 }
 0x13b   :  { %v270_v46 = vpop.f32.mrb[0].mxu0 }
 0x13c   :  { %v296_v47 = vadd.f32 %v697_v45, %v270_v46  ;;  %v1057_v48 = vpop.f32.mrb[1].mxu0 }
 0x13d   :  { %v274_v49 = vpop.f32.mrb[2].mxu0 }
 0x13e   :  { %v300_v50 = vmax.f32 %v296_v47, 0.0  ;;  %v297_v51 = vadd.f32 %v697_v45, %v274_v49  ;;  %v1059_v52 = vpop.f32.mrb[3].mxu0 }
 0x140   :  { %v301_v53 = vmax.f32 %v297_v51, 0.0  ;;  %v309_v54 = vrot.slane %v300_v50, 7  ;;  %v322_v55 = vrot.slane %v300_v50, 1 }
 0x142   :  { %v310_v56 = vrot.slane %v301_v53, 7  ;;  %v323_v57 = vrot.slane %v301_v53, 1  ;;  %v335_v58 = vpack.c.bf16 %v301_v53, %v300_v50 }
 0x143   :  { %v280_v59 = vpop.f32.mrb[4].mxu0 }
 0x144   :  { %v298_v60 = vadd.f32 %v697_v45, %v280_v59  ;;  %v1062_v61 = vpop.f32.mrb[5].mxu0  ;;  %564 = vmatprep.mubr.bf16.mxu1 %v335_v58  ;;  %v311_v62 = vsel %vm308_vm1, %v309_v54, %v310_v56  ;;  %v324_v0 = vsel %vm321_vm3, %v322_v55, %v323_v57 }
 0x145   :  { %v284_v1 = vpop.f32.mrb[6].mxu0  ;;  %v724_v2 = vpack.c.bf16 %v311_v62, %v309_v54  ;;  %v731_v4 = vpack.c.bf16 %v323_v57, %v324_v0 }
 0x146   :  { %v302_v5 = vmax.f32 %v298_v60, 0.0  ;;  %v299_v6 = vadd.f32 %v697_v45, %v284_v1  ;;  %v286_v7 = vpop.f32.mrb[7].mxu0 }
 0x147   :  { %725 = vmatmul.mubr.msk.bf16.vlgmr.msra.gmra.mrb[0].mxu1 %vm1066_vm5, %v724_v2 }
 0x148   :  { %v312_v8 = vrot.slane %v302_v5, 7  ;;  %v325_v9 = vrot.slane %v302_v5, 1  ;;  %v303_v10 = vmax.f32 %v299_v6, 0.0  ;;  %776 = vmatpush3.bf16.msra.mxu1 %v862_v44 }
 0x149   :  { %777 = vmatprep.subr.bf16.mxu1 %v863_v3 }
 0x14a   :  { %v313_v12 = vrot.slane %v303_v10, 7  ;;  %v326_v13 = vrot.slane %v303_v10, 1  ;;  %v338_v14 = vpack.c.bf16 %v303_v10, %v302_v5 }
 0x14c   :  { %778 = vmatpush3.bf16.msra.mxu1 %v863_v3  ;;  %572 = vmatprep.mubr.bf16.mxu1 %v338_v14  ;;  %v314_v15 = vsel %vm308_vm1, %v312_v8, %v313_v12  ;;  %v327_v16 = vsel %vm321_vm3, %v325_v9, %v326_v13 }
 0x14d   :  { %779 = vmatprep.subr.bf16.mxu1 %v864_v11  ;;  %v728_v17 = vpack.c.bf16 %v314_v15, %v312_v8  ;;  %v734_v19 = vpack.c.bf16 %v326_v13, %v327_v16 }
 0x14f   :  { %729 = vmatmul.mubr.msk.bf16.gmra.mrb[4].mxu1 %vm1066_vm5, %v728_v17 }
 0x150   :  { %780 = vmatpush3.bf16.msra.mxu1 %v864_v11  ;;  %791 = vmatprep.mubr.msk.bf16.mxu1 %vm1077_vm6, %v731_v4 }
 0x151   :  { %781 = vmatprep.subr.bf16.mxu1 %v865_v20 }
 0x154   :  { %782 = vmatpush3.bf16.msra.mxu1 %v865_v20 }
 0x155   :  { %783 = vmatprep.subr.bf16.mxu1 %v866_v21 }
 0x158   :  { %784 = vmatpush3.bf16.msra.mxu1 %v866_v21 }
 0x159   :  { %785 = vmatprep.subr.bf16.mxu1 %v867_v22 }
 0x15c   :  { %786 = vmatpush3.bf16.msra.mxu1 %v867_v22 }
 0x15d   :  { %787 = vmatprep.subr.bf16.mxu1 %v868_v23 }
 0x160   :  { %788 = vmatpush3.bf16.msra.mxu1 %v868_v23 }
 0x161   :  { %789 = vmatprep.subr.bf16.mxu1 %v869_v24 }
 0x164   :  { %790 = vmatpush3.bf16.msra.mxu1 %v869_v24 }
 0x167   :  { %792 = vmatmul.mubr.msk.bf16.vlgmr.msra.gmra.mrb[8].mxu1 %vm1077_vm6, %v734_v19 }
 0x21a   :  { %v753_v25 = vpop.f32.mrb[0].mxu1 }
 0x21b   :  { %v754_v26 = vpop.f32.mrb[1].mxu1 }
 0x21c   :  { %v755_v27 = vadd.f32 %v754_v26, %v753_v25  ;;  %v756_v28 = vpop.f32.mrb[2].mxu1 }
 0x21d   :  { %v757_v29 = vpop.f32.mrb[3].mxu1 }
 0x21e   :  { %v758_v30 = vadd.f32 %v757_v29, %v756_v28  ;;  %v567_v31 = vadd.f32 %v755_v27, %v1057_v48 }
 0x220   :  { %v570_v32 = vadd.f32 %v758_v30, %v1059_v52 }
 0x222   :  { %v759_v33 = vpop.f32.mrb[4].mxu1 }
 0x223   :  { %v760_v34 = vpop.f32.mrb[5].mxu1 }
 0x224   :  { %v761_v35 = vadd.f32 %v760_v34, %v759_v33  ;;  %v762_v36 = vpop.f32.mrb[6].mxu1 }
 0x225   :  { %v763_v37 = vpop.f32.mrb[7].mxu1 }
 0x226   :  { %v764_v38 = vadd.f32 %v763_v37, %v762_v36  ;;  %v575_v39 = vadd.f32 %v761_v35, %v1062_v61 }
 0x228   :  { %v578_v40 = vadd.f32 %v764_v38, %v286_v7 }
 0x23a   :  { %v793_v41 = vpop.f32.mrb[8].mxu1 }
 0x23b   :  { %v624_v43 = vadd.f32 %v793_v41, %v575_v39  ;;  %v615_v44 = vpop.f32.mrb[9].mxu1 }
 0x23c   :  { %v616_v45 = vadd.f32 %v615_v44, %v567_v31  ;;  %v794_v46 = vpop.f32.mrb[10].mxu1 }
 0x23d   :  { %v639_v47 = vadd.f32 %v736_v42, %v624_v43  ;;  %v627_v48 = vadd.f32 %v794_v46, %v578_v40  ;;  %v618_v49 = vpop.f32.mrb[11].mxu1 }
 0x23e   :  { %v637_v50 = vadd.f32 %v736_v42, %v616_v45  ;;  %v619_v51 = vadd.f32 %v618_v49, %v570_v32 }
 0x23f   :  { %v643_v52 = vmax.f32 %v639_v47, 0.0  ;;  %v640_v53 = vadd.f32 %v736_v42, %v627_v48 }
 0x240   :  { %v641_v54 = vmax.f32 %v637_v50, 0.0  ;;  %v638_v55 = vadd.f32 %v736_v42, %v619_v51 }
 0x241   :  { %647 = vst [vmem:[#allocation8 + $0x10] sm:$0xff] %v643_v52  ;;  %v644_v56 = vmax.f32 %v640_v53, 0.0 }
 0x242   :  { %645 = vst [vmem:[#allocation8] sm:$0xff] %v641_v54  ;;  %v642_v57 = vmax.f32 %v638_v55, 0.0 }
 0x243   :  { %648 = vst [vmem:[#allocation8 + $0x18] sm:$0xff] %v644_v56 }
 0x244   :  { %646 = vst [vmem:[#allocation8 + $0x8] sm:$0xff] %v642_v57 }
 0x245   :  { %947 = shalt.err (!%p944_p0)
}
 0x246   :  { %s948_s14 = scalar_lea.hbm %s1113_s5, 512 }
 0x247   :  { %p949_p1 = scmp.ne.s32.totalorder %s1113_s5, %s948_s14  ;;  %p952_p2 = scmp.lt.u32.totalorder %s948_s14, %s1113_s5 }
 0x249   :  { %p954_p3 = pnand %p952_p2, %p949_p1 }
 0x24b   :  { %957 = shalt.err (!%p954_p3)
}
 0x24c   :  { %660 = dma.vmem_to_hbm [thread:$0]  %s655_s11, 512, %s1113_s5, [#allocation4], %s966_s30, %s966_s30, %s967_s6  }
 0x24d   :  { %962 = dma.done.wait [#allocation4], 512  }
 0x24e   :  { %963 = vsyncadd [#allocation4], 4294966784 }
 0x24f   :  { %664 = vsyncpa [#allocation3], 1 }
 0x250   :  { %665 = vsyncpa [#allocation6], 1 }
 0x251   :  { %666 = vsyncpa [#allocation4], 1 }

</bundles_post_ra>
